<compile_context>
chip_gen: v6e
topology: v6e:2x2x1
jax: 0.10.0
libtpu: 0.0.40
codegen_flags: <defaults>
</compile_context>

<pallas_src>
import math

import jax
import jax.numpy as jnp
from jax.experimental import pallas as pl
from jax.experimental.pallas import tpu as pltpu


def _round_up(x, m):
    return (x + m - 1) // m * m


def _vmem_capacity_bytes():
    try:
        return int(pltpu.get_tpu_info().vmem_capacity_bytes)
    except Exception:
        return 64 * 2**20  # conservative default: v7x per-TensorCore VMEM


def _make_fused_mlp_kernel(num_layers, num_chunks, chunk_rows, compute_dtype):
    """Kernel body: x_ref, w_0, b_0, ..., w_{L-1}, b_{L-1}, o_ref."""

    def kernel(x_ref, *refs):
        o_ref = refs[-1]
        # Independent batch sub-chunks: the per-layer chains of the chunks have
        # no data dependence on each other, so the scheduler can overlap chunk
        # A's EUP sigmoid / VPU bias+cast with chunk B's MXU matmul.
        acts = [
            x_ref[pl.ds(c * chunk_rows, chunk_rows), :]  # bf16, straight off VMEM
            for c in range(num_chunks)
        ]
        # Static Python loop: num_layers is a compile-time constant; the whole
        # chain unrolls and the activation stays in vregs/VMEM.
        for l in range(num_layers):
            w = refs[2 * l][...]                          # bf16 weights (resident)
            b = refs[2 * l + 1][...].astype(jnp.float32)  # f32 bias
            new_acts = []
            for c in range(num_chunks):
                y = jnp.dot(acts[c], w, preferred_element_type=jnp.float32)  # MXU
                # bias add + sigmoid in f32 (safe on v5e: no bf16 VPU/EUP there),
                # only the *stored* activation is bf16.
                new_acts.append(jax.nn.sigmoid(y + b).astype(compute_dtype))
            acts = new_acts
        for c in range(num_chunks):
            o_ref[pl.ds(c * chunk_rows, chunk_rows), :] = acts[c].astype(o_ref.dtype)

    return kernel


def init_mlp_brick_params(key, input_size, output_size, length, width):
    """Deterministic init mirroring torch.nn.Linear default U(-1/sqrt(in), 1/sqrt(in))."""
    sizes = [int(input_size)] + [int(width)] * int(length) + [int(output_size)]
    params = []
    for i in range(len(sizes) - 1):
        fan_in, fan_out = sizes[i], sizes[i + 1]
        key, kw, kb = jax.random.split(key, 3)
        bound = 1.0 / math.sqrt(fan_in)
        # Stored as (in, out) == transpose of PyTorch's (out, in) weight.
        w = jax.random.uniform(kw, (fan_in, fan_out), jnp.float32, -bound, bound)
        b = jax.random.uniform(kb, (1, fan_out), jnp.float32, -bound, bound)
        params.append((w, b))
    return params


def mlp_brick_forward(data, params, *, compute_dtype=jnp.bfloat16, batch_tile=512):
    """Fused forward pass: sigmoid(... sigmoid(x @ W0 + b0) ... @ W_L + b_L)."""
    B, Din = data.shape
    num_layers = len(params)
    assert num_layers >= 1
    assert params[0][0].shape[0] == Din

    # Padded feature sizes at every layer boundary (multiples of 128 lanes).
    feat = [params[0][0].shape[0]] + [w.shape[1] for (w, _) in params]
    feat_pad = [_round_up(d, 128) for d in feat]
    out_size = feat[-1]

    # ---- Batch tiling ------------------------------------------------------
    # Balanced tiles so Bp doesn't balloon when B is just over a boundary;
    # multiple of 16 for bf16 sublane packing.  Guarantee >=2 grid steps for
    # larger batches so a v7x megacore ("parallel" axis) can use both TCs.
    num_tiles = max(1, -(-B // int(batch_tile)))
    if num_tiles == 1 and B > 256:
        num_tiles = 2
    tb = _round_up(-(-B // num_tiles), 16)
    Bp = tb * num_tiles

    # Sub-chunking for narrow layers: with <=256 padded lanes the per-layer
    # bias+sigmoid is comparable to the matmul; two independent chains let the
    # scheduler hide it under the MXU.  Needs chunk rows to stay >= 16.
    num_chunks = 2 if (max(feat_pad) <= 256 and tb % 32 == 0) else 1
    chunk_rows = tb // num_chunks

    # ---- Host-side pad/cast (plain XLA ops, outside the kernel) ------------
    x_p = jnp.zeros((Bp, feat_pad[0]), compute_dtype).at[:B, :Din].set(
        data.astype(compute_dtype)
    )
    w_list, b_list = [], []
    for i, (w, b) in enumerate(params):
        din, dout = w.shape
        w_p = jnp.zeros((feat_pad[i], feat_pad[i + 1]), compute_dtype)
        w_p = w_p.at[:din, :dout].set(w.astype(compute_dtype))
        b_p = jnp.zeros((1, feat_pad[i + 1]), jnp.float32)
        b_p = b_p.at[:, :dout].set(b.reshape(1, -1).astype(jnp.float32))
        w_list.append(w_p)
        b_list.append(b_p)

    out_dtype = data.dtype
    comp_isz = jnp.dtype(compute_dtype).itemsize
    out_isz = jnp.dtype(out_dtype).itemsize
    weight_bytes = sum(w.size * w.dtype.itemsize for w in w_list)
    bias_bytes = sum(b.size * b.dtype.itemsize for b in b_list)
    vmem_cap = _vmem_capacity_bytes()

    # Advisory cost estimate for the XLA scheduler.
    flops = sum(2 * Bp * feat_pad[i] * feat_pad[i + 1] for i in range(num_layers))
    transcendentals = sum(Bp * feat_pad[i + 1] for i in range(num_layers))
    bytes_accessed = (
        x_p.size * comp_isz + weight_bytes + bias_bytes + Bp * feat_pad[-1] * out_isz
    )

    kernel = _make_fused_mlp_kernel(num_layers, num_chunks, chunk_rows, compute_dtype)

    def build_and_call(single_buffer_weights):
        in_specs = [pl.BlockSpec((tb, feat_pad[0]), lambda i: (i, 0))]
        operands = [x_p]
        for l in range(num_layers):
            w_p, b_p = w_list[l], b_list[l]
            if single_buffer_weights:
                # Grid-invariant operands: one resident buffer, no double-buffer.
                w_spec = pl.BlockSpec(
                    w_p.shape, lambda i: (0, 0), pipeline_mode=pl.Buffered(1)
                )
                b_spec = pl.BlockSpec(
                    b_p.shape, lambda i: (0, 0), pipeline_mode=pl.Buffered(1)
                )
            else:
                w_spec = pl.BlockSpec(w_p.shape, lambda i: (0, 0))
                b_spec = pl.BlockSpec(b_p.shape, lambda i: (0, 0))
            in_specs += [w_spec, b_spec]
            operands += [w_p, b_p]
        out_spec = pl.BlockSpec((tb, feat_pad[-1]), lambda i: (i, 0))

        # VMEM budget: double-buffered x tile + double-buffered out tile
        # + resident params (x1 or x2 depending on buffering)
        # + in-kernel activation scratch (f32 y + bf16 act at the widest layer).
        w_bufs = 1 if single_buffer_weights else 2
        budget = (
            2 * tb * feat_pad[0] * comp_isz
            + 2 * tb * feat_pad[-1] * out_isz
            + w_bufs * (weight_bytes + bias_bytes)
            + tb * max(feat_pad) * (4 + comp_isz)
        )
        vmem_limit = int(
            min(max(int(budget * 1.25), 16 * 2**20), int(vmem_cap * 0.85))
        )
        # TODO(synk): when weight_bytes exceeds ~60-70% of vmem_cap (e.g. very
        # wide/deep configs on v7x's 64 MiB), switch the weights to
        # memory_space=pl.ANY and stream (K, N) weight tiles per layer with
        # pltpu.emit_pipeline, keeping the activation resident in VMEM.

        return pl.pallas_call(
            kernel,
            out_shape=jax.ShapeDtypeStruct((Bp, feat_pad[-1]), out_dtype),
            grid=(num_tiles,),
            in_specs=in_specs,
            out_specs=out_spec,
            compiler_params=pltpu.CompilerParams(
                dimension_semantics=("parallel",),
                vmem_limit_bytes=vmem_limit,
            ),
            cost_estimate=pl.CostEstimate(
                flops=flops,
                transcendentals=transcendentals,
                bytes_accessed=bytes_accessed,
            ),
        )(*operands)

    try:
        out_padded = build_and_call(True)
    except Exception:
        # pipeline_mode=pl.Buffered(1) not supported on this jax version /
        # backend — fall back to default double-buffered grid-invariant specs.
        out_padded = build_and_call(False)

    return out_padded[:B, :out_size]


if __name__ == "__main__":
    # Small shapes consistent with the module's forward: data is (batch, input_size).
    batch = 8
    input_size = 32
    output_size = 16
    length = 2
    width = 32

    key = jax.random.PRNGKey(0)
    key, kx = jax.random.split(key)
    x = jax.random.normal(kx, (batch, input_size), jnp.float32)

    params = init_mlp_brick_params(key, input_size, output_size, length, width)

    out = mlp_brick_forward(x, params)
    out = jax.block_until_ready(out)

    # Pure-JAX f32 reference of the same math (kernel uses bf16 matmul inputs
    # and bf16 inter-layer activation storage with f32 accumulation, so the
    # tolerance is loosened accordingly).
    ref = x
    for w, b in params:
        ref = jax.nn.sigmoid(ref @ w + b)

    assert out.shape == (batch, output_size)
    assert jnp.allclose(out, ref, atol=2e-2, rtol=2e-2), (
        float(jnp.max(jnp.abs(out - ref)))
    )

    print("KERNEL_OK")
</pallas_src>

<mosaic_0001>
module attributes {stable_mosaic.version = 11 : i64} {
  func.func @kernel(%arg0: i32, %arg1: memref<16x128xbf16, #tpu.memory_space<vmem>>, %arg2: memref<128x128xbf16, #tpu.memory_space<vmem>>, %arg3: memref<1x128xf32, #tpu.memory_space<vmem>>, %arg4: memref<128x128xbf16, #tpu.memory_space<vmem>>, %arg5: memref<1x128xf32, #tpu.memory_space<vmem>>, %arg6: memref<128x128xbf16, #tpu.memory_space<vmem>>, %arg7: memref<1x128xf32, #tpu.memory_space<vmem>>, %arg8: memref<16x128xf32, #tpu.memory_space<vmem>>) attributes {dimension_semantics = [#tpu.dimension_semantics<parallel>], iteration_bounds = array<i64: 1>, scalar_prefetch = 0 : i64, scratch_operands = 0 : i64, tpu.core_type = #tpu.core_type<tc>, window_params = [{transform_indices = @transform_0, window_bounds = array<i64: 16, 128>}, {pipeline_mode = #tpu.pipeline_mode<synchronous>, transform_indices = @transform_1, window_bounds = array<i64: 128, 128>}, {pipeline_mode = #tpu.pipeline_mode<synchronous>, transform_indices = @transform_2, window_bounds = array<i64: 1, 128>}, {pipeline_mode = #tpu.pipeline_mode<synchronous>, transform_indices = @transform_3, window_bounds = array<i64: 128, 128>}, {pipeline_mode = #tpu.pipeline_mode<synchronous>, transform_indices = @transform_4, window_bounds = array<i64: 1, 128>}, {pipeline_mode = #tpu.pipeline_mode<synchronous>, transform_indices = @transform_5, window_bounds = array<i64: 128, 128>}, {pipeline_mode = #tpu.pipeline_mode<synchronous>, transform_indices = @transform_6, window_bounds = array<i64: 1, 128>}, {transform_indices = @transform_7, window_bounds = array<i64: 16, 128>}]} {
    %c0 = arith.constant 0 : index
    %c0_0 = arith.constant 0 : index
    %0 = vector.load %arg1[%c0, %c0_0] : memref<16x128xbf16, #tpu.memory_space<vmem>>, vector<16x128xbf16>
    %c0_1 = arith.constant 0 : index
    %c0_2 = arith.constant 0 : index
    %1 = vector.load %arg2[%c0_1, %c0_2] : memref<128x128xbf16, #tpu.memory_space<vmem>>, vector<128x128xbf16>
    %c0_3 = arith.constant 0 : index
    %c0_4 = arith.constant 0 : index
    %2 = vector.load %arg3[%c0_3, %c0_4] : memref<1x128xf32, #tpu.memory_space<vmem>>, vector<1x128xf32>
    %cst = arith.constant dense<0.000000e+00> : vector<16x128xf32>
    %3 = tpu.matmul %0, %1, %cst {dimension_numbers = #tpu.dot_dimension_numbers<[1], [0], [0], [1], [0, 0, 1, 1], [], []>} : vector<16x128xbf16>, vector<128x128xbf16>, vector<16x128xf32> -> vector<16x128xf32>
    %4 = vector.broadcast %2 : vector<1x128xf32> to vector<16x128xf32>
    %5 = arith.addf %3, %4 : vector<16x128xf32>
    %6 = arith.negf %5 : vector<16x128xf32>
    %7 = math.exp %6 : vector<16x128xf32>
    %cst_5 = arith.constant 1.000000e+00 : f32
    %8 = vector.broadcast %cst_5 : f32 to vector<16x128xf32>
    %9 = arith.addf %8, %7 : vector<16x128xf32>
    %10 = arith.divf %8, %9 : vector<16x128xf32>
    %11 = arith.truncf %10 : vector<16x128xf32> to vector<16x128xbf16>
    %c0_6 = arith.constant 0 : index
    %c0_7 = arith.constant 0 : index
    %12 = vector.load %arg4[%c0_6, %c0_7] : memref<128x128xbf16, #tpu.memory_space<vmem>>, vector<128x128xbf16>
    %c0_8 = arith.constant 0 : index
    %c0_9 = arith.constant 0 : index
    %13 = vector.load %arg5[%c0_8, %c0_9] : memref<1x128xf32, #tpu.memory_space<vmem>>, vector<1x128xf32>
    %cst_10 = arith.constant dense<0.000000e+00> : vector<16x128xf32>
    %14 = tpu.matmul %11, %12, %cst_10 {dimension_numbers = #tpu.dot_dimension_numbers<[1], [0], [0], [1], [0, 0, 1, 1], [], []>} : vector<16x128xbf16>, vector<128x128xbf16>, vector<16x128xf32> -> vector<16x128xf32>
    %15 = vector.broadcast %13 : vector<1x128xf32> to vector<16x128xf32>
    %16 = arith.addf %14, %15 : vector<16x128xf32>
    %17 = arith.negf %16 : vector<16x128xf32>
    %18 = math.exp %17 : vector<16x128xf32>
    %cst_11 = arith.constant 1.000000e+00 : f32
    %19 = vector.broadcast %cst_11 : f32 to vector<16x128xf32>
    %20 = arith.addf %19, %18 : vector<16x128xf32>
    %21 = arith.divf %19, %20 : vector<16x128xf32>
    %22 = arith.truncf %21 : vector<16x128xf32> to vector<16x128xbf16>
    %c0_12 = arith.constant 0 : index
    %c0_13 = arith.constant 0 : index
    %23 = vector.load %arg6[%c0_12, %c0_13] : memref<128x128xbf16, #tpu.memory_space<vmem>>, vector<128x128xbf16>
    %c0_14 = arith.constant 0 : index
    %c0_15 = arith.constant 0 : index
    %24 = vector.load %arg7[%c0_14, %c0_15] : memref<1x128xf32, #tpu.memory_space<vmem>>, vector<1x128xf32>
    %cst_16 = arith.constant dense<0.000000e+00> : vector<16x128xf32>
    %25 = tpu.matmul %22, %23, %cst_16 {dimension_numbers = #tpu.dot_dimension_numbers<[1], [0], [0], [1], [0, 0, 1, 1], [], []>} : vector<16x128xbf16>, vector<128x128xbf16>, vector<16x128xf32> -> vector<16x128xf32>
    %26 = vector.broadcast %24 : vector<1x128xf32> to vector<16x128xf32>
    %27 = arith.addf %25, %26 : vector<16x128xf32>
    %28 = arith.negf %27 : vector<16x128xf32>
    %29 = math.exp %28 : vector<16x128xf32>
    %cst_17 = arith.constant 1.000000e+00 : f32
    %30 = vector.broadcast %cst_17 : f32 to vector<16x128xf32>
    %31 = arith.addf %30, %29 : vector<16x128xf32>
    %32 = arith.divf %30, %31 : vector<16x128xf32>
    %33 = arith.truncf %32 : vector<16x128xf32> to vector<16x128xbf16>
    %34 = arith.extf %33 : vector<16x128xbf16> to vector<16x128xf32>
    %c0_18 = arith.constant 0 : index
    %c0_19 = arith.constant 0 : index
    %35 = vector.load %arg8[%c0_18, %c0_19] : memref<16x128xf32, #tpu.memory_space<vmem>>, vector<16x128xf32>
    tpu.vector_store %arg8[%c0_18, %c0_19], %34 {strides = array<i32>} : memref<16x128xf32, #tpu.memory_space<vmem>>, vector<16x128xf32>,
    return
  }
  func.func @transform_0(%arg0: i32) -> (i32, i32) {
    %c0_i32 = arith.constant 0 : i32
    %c0_i32_0 = arith.constant 0 : i32
    return %arg0, %c0_i32 : i32, i32
  }
  func.func @transform_1(%arg0: i32) -> (i32, i32) {
    %c0_i32 = arith.constant 0 : i32
    %c0_i32_0 = arith.constant 0 : i32
    %c0_i32_1 = arith.constant 0 : i32
    return %c0_i32, %c0_i32_0 : i32, i32
  }
  func.func @transform_2(%arg0: i32) -> (i32, i32) {
    %c0_i32 = arith.constant 0 : i32
    %c0_i32_0 = arith.constant 0 : i32
    %c0_i32_1 = arith.constant 0 : i32
    return %c0_i32, %c0_i32_0 : i32, i32
  }
  func.func @transform_3(%arg0: i32) -> (i32, i32) {
    %c0_i32 = arith.constant 0 : i32
    %c0_i32_0 = arith.constant 0 : i32
    %c0_i32_1 = arith.constant 0 : i32
    return %c0_i32, %c0_i32_0 : i32, i32
  }
  func.func @transform_4(%arg0: i32) -> (i32, i32) {
    %c0_i32 = arith.constant 0 : i32
    %c0_i32_0 = arith.constant 0 : i32
    %c0_i32_1 = arith.constant 0 : i32
    return %c0_i32, %c0_i32_0 : i32, i32
  }
  func.func @transform_5(%arg0: i32) -> (i32, i32) {
    %c0_i32 = arith.constant 0 : i32
    %c0_i32_0 = arith.constant 0 : i32
    %c0_i32_1 = arith.constant 0 : i32
    return %c0_i32, %c0_i32_0 : i32, i32
  }
  func.func @transform_6(%arg0: i32) -> (i32, i32) {
    %c0_i32 = arith.constant 0 : i32
    %c0_i32_0 = arith.constant 0 : i32
    %c0_i32_1 = arith.constant 0 : i32
    return %c0_i32, %c0_i32_0 : i32, i32
  }
  func.func @transform_7(%arg0: i32) -> (i32, i32) {
    %c0_i32 = arith.constant 0 : i32
    %c0_i32_0 = arith.constant 0 : i32
    return %arg0, %c0_i32 : i32, i32
  }
}

module attributes {stable_mosaic.version = 11 : i64} {
  func.func @kernel(%arg0: i32, %arg1: memref<16x128xbf16, #tpu.memory_space<vmem>>, %arg2: memref<128x128xbf16, #tpu.memory_space<vmem>>, %arg3: memref<1x128xf32, #tpu.memory_space<vmem>>, %arg4: memref<128x128xbf16, #tpu.memory_space<vmem>>, %arg5: memref<1x128xf32, #tpu.memory_space<vmem>>, %arg6: memref<128x128xbf16, #tpu.memory_space<vmem>>, %arg7: memref<1x128xf32, #tpu.memory_space<vmem>>, %arg8: memref<16x128xf32, #tpu.memory_space<vmem>>) attributes {dimension_semantics = [#tpu.dimension_semantics<parallel>], iteration_bounds = array<i64: 1>, scalar_prefetch = 0 : i64, scratch_operands = 0 : i64, tpu.core_type = #tpu.core_type<tc>, window_params = [{transform_indices = @transform_0, window_bounds = array<i64: 16, 128>}, {pipeline_mode = #tpu.pipeline_mode<synchronous>, transform_indices = @transform_1, window_bounds = array<i64: 128, 128>}, {pipeline_mode = #tpu.pipeline_mode<synchronous>, transform_indices = @transform_2, window_bounds = array<i64: 1, 128>}, {pipeline_mode = #tpu.pipeline_mode<synchronous>, transform_indices = @transform_3, window_bounds = array<i64: 128, 128>}, {pipeline_mode = #tpu.pipeline_mode<synchronous>, transform_indices = @transform_4, window_bounds = array<i64: 1, 128>}, {pipeline_mode = #tpu.pipeline_mode<synchronous>, transform_indices = @transform_5, window_bounds = array<i64: 128, 128>}, {pipeline_mode = #tpu.pipeline_mode<synchronous>, transform_indices = @transform_6, window_bounds = array<i64: 1, 128>}, {transform_indices = @transform_7, window_bounds = array<i64: 16, 128>}]} {
    %c0 = arith.constant 0 : index
    %c0_0 = arith.constant 0 : index
    %0 = vector.load %arg1[%c0, %c0_0] : memref<16x128xbf16, #tpu.memory_space<vmem>>, vector<16x128xbf16>
    %c0_1 = arith.constant 0 : index
    %c0_2 = arith.constant 0 : index
    %1 = vector.load %arg2[%c0_1, %c0_2] : memref<128x128xbf16, #tpu.memory_space<vmem>>, vector<128x128xbf16>
    %c0_3 = arith.constant 0 : index
    %c0_4 = arith.constant 0 : index
    %2 = vector.load %arg3[%c0_3, %c0_4] : memref<1x128xf32, #tpu.memory_space<vmem>>, vector<1x128xf32>
    %cst = arith.constant dense<0.000000e+00> : vector<16x128xf32>
    %3 = tpu.matmul %0, %1, %cst {dimension_numbers = #tpu.dot_dimension_numbers<[1], [0], [0], [1], [0, 0, 1, 1], [], []>} : vector<16x128xbf16>, vector<128x128xbf16>, vector<16x128xf32> -> vector<16x128xf32>
    %4 = vector.broadcast %2 : vector<1x128xf32> to vector<16x128xf32>
    %5 = arith.addf %3, %4 : vector<16x128xf32>
    %6 = arith.negf %5 : vector<16x128xf32>
    %7 = math.exp %6 : vector<16x128xf32>
    %cst_5 = arith.constant 1.000000e+00 : f32
    %8 = vector.broadcast %cst_5 : f32 to vector<16x128xf32>
    %9 = arith.addf %8, %7 : vector<16x128xf32>
    %10 = arith.divf %8, %9 : vector<16x128xf32>
    %11 = arith.truncf %10 : vector<16x128xf32> to vector<16x128xbf16>
    %c0_6 = arith.constant 0 : index
    %c0_7 = arith.constant 0 : index
    %12 = vector.load %arg4[%c0_6, %c0_7] : memref<128x128xbf16, #tpu.memory_space<vmem>>, vector<128x128xbf16>
    %c0_8 = arith.constant 0 : index
    %c0_9 = arith.constant 0 : index
    %13 = vector.load %arg5[%c0_8, %c0_9] : memref<1x128xf32, #tpu.memory_space<vmem>>, vector<1x128xf32>
    %cst_10 = arith.constant dense<0.000000e+00> : vector<16x128xf32>
    %14 = tpu.matmul %11, %12, %cst_10 {dimension_numbers = #tpu.dot_dimension_numbers<[1], [0], [0], [1], [0, 0, 1, 1], [], []>} : vector<16x128xbf16>, vector<128x128xbf16>, vector<16x128xf32> -> vector<16x128xf32>
    %15 = vector.broadcast %13 : vector<1x128xf32> to vector<16x128xf32>
    %16 = arith.addf %14, %15 : vector<16x128xf32>
    %17 = arith.negf %16 : vector<16x128xf32>
    %18 = math.exp %17 : vector<16x128xf32>
    %cst_11 = arith.constant 1.000000e+00 : f32
    %19 = vector.broadcast %cst_11 : f32 to vector<16x128xf32>
    %20 = arith.addf %19, %18 : vector<16x128xf32>
    %21 = arith.divf %19, %20 : vector<16x128xf32>
    %22 = arith.truncf %21 : vector<16x128xf32> to vector<16x128xbf16>
    %c0_12 = arith.constant 0 : index
    %c0_13 = arith.constant 0 : index
    %23 = vector.load %arg6[%c0_12, %c0_13] : memref<128x128xbf16, #tpu.memory_space<vmem>>, vector<128x128xbf16>
    %c0_14 = arith.constant 0 : index
    %c0_15 = arith.constant 0 : index
    %24 = vector.load %arg7[%c0_14, %c0_15] : memref<1x128xf32, #tpu.memory_space<vmem>>, vector<1x128xf32>
    %cst_16 = arith.constant dense<0.000000e+00> : vector<16x128xf32>
    %25 = tpu.matmul %22, %23, %cst_16 {dimension_numbers = #tpu.dot_dimension_numbers<[1], [0], [0], [1], [0, 0, 1, 1], [], []>} : vector<16x128xbf16>, vector<128x128xbf16>, vector<16x128xf32> -> vector<16x128xf32>
    %26 = vector.broadcast %24 : vector<1x128xf32> to vector<16x128xf32>
    %27 = arith.addf %25, %26 : vector<16x128xf32>
    %28 = arith.negf %27 : vector<16x128xf32>
    %29 = math.exp %28 : vector<16x128xf32>
    %cst_17 = arith.constant 1.000000e+00 : f32
    %30 = vector.broadcast %cst_17 : f32 to vector<16x128xf32>
    %31 = arith.addf %30, %29 : vector<16x128xf32>
    %32 = arith.divf %30, %31 : vector<16x128xf32>
    %33 = arith.truncf %32 : vector<16x128xf32> to vector<16x128xbf16>
    %34 = arith.extf %33 : vector<16x128xbf16> to vector<16x128xf32>
    %c0_18 = arith.constant 0 : index
    %c0_19 = arith.constant 0 : index
    %35 = vector.load %arg8[%c0_18, %c0_19] : memref<16x128xf32, #tpu.memory_space<vmem>>, vector<16x128xf32>
    tpu.vector_store %arg8[%c0_18, %c0_19], %34 {strides = array<i32>} : memref<16x128xf32, #tpu.memory_space<vmem>>, vector<16x128xf32>,
    return
  }
  func.func @transform_0(%arg0: i32) -> (i32, i32) {
    %c0_i32 = arith.constant 0 : i32
    %c0_i32_0 = arith.constant 0 : i32
    return %arg0, %c0_i32 : i32, i32
  }
  func.func @transform_1(%arg0: i32) -> (i32, i32) {
    %c0_i32 = arith.constant 0 : i32
    %c0_i32_0 = arith.constant 0 : i32
    %c0_i32_1 = arith.constant 0 : i32
    return %c0_i32, %c0_i32_0 : i32, i32
  }
  func.func @transform_2(%arg0: i32) -> (i32, i32) {
    %c0_i32 = arith.constant 0 : i32
    %c0_i32_0 = arith.constant 0 : i32
    %c0_i32_1 = arith.constant 0 : i32
    return %c0_i32, %c0_i32_0 : i32, i32
  }
  func.func @transform_3(%arg0: i32) -> (i32, i32) {
    %c0_i32 = arith.constant 0 : i32
    %c0_i32_0 = arith.constant 0 : i32
    %c0_i32_1 = arith.constant 0 : i32
    return %c0_i32, %c0_i32_0 : i32, i32
  }
  func.func @transform_4(%arg0: i32) -> (i32, i32) {
    %c0_i32 = arith.constant 0 : i32
    %c0_i32_0 = arith.constant 0 : i32
    %c0_i32_1 = arith.constant 0 : i32
    return %c0_i32, %c0_i32_0 : i32, i32
  }
  func.func @transform_5(%arg0: i32) -> (i32, i32) {
    %c0_i32 = arith.constant 0 : i32
    %c0_i32_0 = arith.constant 0 : i32
    %c0_i32_1 = arith.constant 0 : i32
    return %c0_i32, %c0_i32_0 : i32, i32
  }
  func.func @transform_6(%arg0: i32) -> (i32, i32) {
    %c0_i32 = arith.constant 0 : i32
    %c0_i32_0 = arith.constant 0 : i32
    %c0_i32_1 = arith.constant 0 : i32
    return %c0_i32, %c0_i32_0 : i32, i32
  }
  func.func @transform_7(%arg0: i32) -> (i32, i32) {
    %c0_i32 = arith.constant 0 : i32
    %c0_i32_0 = arith.constant 0 : i32
    return %arg0, %c0_i32 : i32, i32
  }
}

</mosaic_0001>

<bundles_post_ra>
// kernel: tpu_custom_call.1
= control target key start
LH: loop header
LB: loop body
LE: loop exit
PB: predicated region body
PF: predicated region fallthrough
CT: control target
= control target key end

     0   :  { %12 = vsyncpa [#allocation3], 0  ;;  %s895_s0 = inlined_call_operand.hbm [shape: bf16[16,128], index: 0, kind: input, shape index: {}]   ;;  %s896_s1 = inlined_call_operand.hbm [shape: bf16[128,128], index: 1, kind: input, shape index: {}]   ;;  %s897_s2 = inlined_call_operand.vmem [shape: f32[1,128], index: 2, kind: input, shape index: {}]   ;;  %s898_s3 = inlined_call_operand.hbm [shape: bf16[128,128], index: 3, kind: input, shape index: {}]   ;;  %s899_s4 = inlined_call_operand.vmem [shape: f32[1,128], index: 4, kind: input, shape index: {}]   ;;  %s900_s5 = inlined_call_operand.hbm [shape: bf16[128,128], index: 5, kind: input, shape index: {}]   ;;  %s901_s6 = inlined_call_operand.vmem [shape: f32[1,128], index: 6, kind: input, shape index: {}]   ;;  %s902_s7 = inlined_call_operand.hbm [shape: f32[16,128], index: 7, kind: output, shape index: {}]  }
   0x1   :  { %13 = vsyncpa [#allocation6], 0 }
   0x2   :  { %14 = vsyncpa [#allocation9], 0 }
   0x3   :  { %15 = vsyncpa [#allocation4], 0  ;;  %s778_s24 = smov [#allocation5]   ;;  %s779_s26 = smov [#allocation2]  }
   0x4   :  { %s33_s25 = sshll.u32 %s778_s24, 4  ;;  %s21_s27 = sshll.u32 %s779_s26, 4  ;;  %s34_s25 = int_to_ptr.vmem [resolvable:$true] %s33_s25  ;;  %s22_s27 = int_to_ptr.vmem [resolvable:$true] %s21_s27 }
   0x5   :  { %s678_s28 = scalar_lea.vmem %s34_s25, 1024  ;;  %p683_p1 = scmp.lt.s32.totalorder %s34_s25, %s34_s25 }
   0x6   :  { %p679_p0 = scmp.ne.s32.totalorder %s34_s25, %s678_s28  ;;  %p684_p2 = scmp.lt.s32.totalorder %s678_s28, %s678_s28 }
   0x8   :  { %p685_p3 = por %p684_p2, %p683_p1 }
   0xa   :  { %p686_p4 = pnand %p685_p3, %p679_p0 }
   0xc   :  { %689 = shalt.err (!%p686_p4)
}
   0xd   :  { %s780_s29 = smov 64   ;;  %s781_s30 = smov 4  }
   0xe   :  { %39 = dma.hbm_to_vmem [thread:$0]  %s896_s1, 1024, %s34_s25, [#allocation6], %s780_s29, %s780_s29, %s781_s30  }
   0xf   :  { %s698_s10 = scalar_lea.vmem %s22_s27, 128  ;;  %p703_p6 = scmp.lt.s32.totalorder %s22_s27, %s22_s27 }
  0x10   :  { %p699_p5 = scmp.ne.s32.totalorder %s22_s27, %s698_s10  ;;  %p704_p7 = scmp.lt.s32.totalorder %s698_s10, %s698_s10 }
  0x12   :  { %p705_p8 = por %p704_p7, %p703_p6 }
  0x14   :  { %p706_p9 = pnand %p705_p8, %p699_p5 }
  0x16   :  { %709 = shalt.err (!%p706_p9)
}
  0x17   :  { %27 = dma.hbm_to_vmem [thread:$0]  %s895_s0, 128, %s22_s27, [#allocation3], %s780_s29, %s780_s29, %s781_s30  }
  0x18   :  { %s782_s13 = smov [#allocation7]   ;;  %s783_s15 = smov [#allocation8]  }
  0x19   :  { %s47_s14 = sshll.u32 %s782_s13, 4  ;;  %s61_s16 = sshll.u32 %s783_s15, 4  ;;  %s48_s14 = int_to_ptr.vmem [resolvable:$true] %s47_s14  ;;  %s62_s16 = int_to_ptr.vmem [resolvable:$true] %s61_s16 }
  0x1a   :  { %s718_s1 = scalar_lea.vmem %s48_s14, 1024  ;;  %p723_p11 = scmp.lt.s32.totalorder %s48_s14, %s48_s14 }
  0x1b   :  { %p719_p10 = scmp.ne.s32.totalorder %s48_s14, %s718_s1  ;;  %p724_p12 = scmp.lt.s32.totalorder %s718_s1, %s718_s1 }
  0x1d   :  { %p725_p13 = por %p724_p12, %p723_p11 }
  0x1f   :  { %p726_p0 = pnand %p725_p13, %p719_p10 }
  0x21   :  { %729 = shalt.err (!%p726_p0)
}
  0x22   :  { %53 = dma.hbm_to_vmem [thread:$0]  %s898_s3, 1024, %s48_s14, [#allocation6], %s780_s29, %s780_s29, %s781_s30  }
  0x23   :  { %s738_s0 = scalar_lea.vmem %s62_s16, 1024  ;;  %p743_p2 = scmp.lt.s32.totalorder %s62_s16, %s62_s16 }
  0x24   :  { %p739_p1 = scmp.ne.s32.totalorder %s62_s16, %s738_s0  ;;  %p744_p3 = scmp.lt.s32.totalorder %s738_s0, %s738_s0 }
  0x26   :  { %p745_p4 = por %p744_p3, %p743_p2 }
  0x28   :  { %p746_p5 = pnand %p745_p4, %p739_p1 }
  0x2a   :  { %749 = shalt.err (!%p746_p5)
}
  0x2b   :  { %67 = dma.hbm_to_vmem [thread:$0]  %s900_s5, 1024, %s62_s16, [#allocation9], %s780_s29, %s780_s29, %s781_s30  }
  0x2c   :  { %770 = dma.done.wait [#allocation3], 128  }
  0x2d   :  { %771 = vsyncadd [#allocation3], 4294967168 }
  0x2e   :  { %772 = dma.done.wait [#allocation6], 2048  }
  0x2f   :  { %773 = vsyncadd [#allocation6], 4294965248 }
  0x30   :  { %774 = dma.done.wait [#allocation9], 1024  }
  0x31   :  { %775 = vsyncadd [#allocation9], 4294966272  ;;  %v784_v0 = vmov 0.0   ;;  %vm785_vm0 = vmmov 0   ;;  %v621_v1 = vld [vmem:[#allocation5 + $0x38] sm:$0xff]   ;;  %v622_v2 = vld [vmem:[#allocation5 + $0x30] sm:$0xff]  }
  0x32   :  { %550 = vmatprep.subr.bf16.mxu0 %v784_v0  ;;  %566 = vmatprep.mubr.msk.bf16.mxu0 %vm785_vm0, %v784_v0  ;;  %v623_v3 = vld [vmem:[#allocation5 + $0x28] sm:$0xff]   ;;  %v624_v4 = vld [vmem:[#allocation5 + $0x20] sm:$0xff]   ;;  %v625_v5 = vld [vmem:[#allocation5 + $0x18] sm:$0xff]   ;;  %s786_s23 = smov [#allocation10]  }
  0x33   :  { %570 = vmatprep.subr.bf16.mxu1 %v784_v0  ;;  %586 = vmatprep.mubr.msk.bf16.mxu1 %vm785_vm0, %v784_v0  ;;  %v626_v6 = vld [vmem:[#allocation5 + $0x10] sm:$0xff]   ;;  %v627_v7 = vld [vmem:[#allocation5 + $0x8] sm:$0xff]   ;;  %v628_v8 = vld [vmem:[#allocation5] sm:$0xff]   ;;  %s475_s24 = sshll.u32 %s786_s23, 4  ;;  %s476_s24 = int_to_ptr.vmem [resolvable:$true] %s475_s24 }
  0x34   :  { %551 = vmatpush3.bf16.msra.mxu0 %v621_v1  ;;  %v629_v9 = vld [vmem:[#allocation2] sm:$0xff]   ;;  %v631_v11 = vld [vmem:[#allocation7 + $0x30] sm:$0xff]   ;;  %v632_v12 = vld [vmem:[#allocation7 + $0x28] sm:$0xff]   ;;  %p755_p7 = scmp.lt.s32.totalorder %s476_s24, %s476_s24 }
  0x35   :  { %552 = vmatprep.subr.bf16.mxu0 %v784_v0  ;;  %v630_v10 = vld [vmem:[#allocation7 + $0x38] sm:$0xff]   ;;  %v633_v13 = vld [vmem:[#allocation7 + $0x20] sm:$0xff]   ;;  %v635_v15 = vld [vmem:[#allocation7 + $0x10] sm:$0xff]  }
  0x36   :  { %571 = vmatpush3.bf16.msra.mxu1 %v630_v10  ;;  %v634_v14 = vld [vmem:[#allocation7 + $0x18] sm:$0xff]   ;;  %v636_v16 = vld [vmem:[#allocation7 + $0x8] sm:$0xff]   ;;  %v637_v17 = vld [vmem:[#allocation7] sm:$0xff]  }
  0x37   :  { %572 = vmatprep.subr.bf16.mxu1 %v784_v0  ;;  %v489_v18 = vld [vmem:[%s897_s2] ss:$0 sm:$0xff]  ;;  %v639_v35 = vld [vmem:[#allocation8 + $0x30] sm:$0xff]   ;;  %v640_v36 = vld [vmem:[#allocation8 + $0x28] sm:$0xff]  }
  0x38   :  { %553 = vmatpush3.bf16.msra.mxu0 %v622_v2  ;;  %v638_v34 = vld [vmem:[#allocation8 + $0x38] sm:$0xff]   ;;  %v641_v37 = vld [vmem:[#allocation8 + $0x20] sm:$0xff]   ;;  %v643_v39 = vld [vmem:[#allocation8 + $0x10] sm:$0xff]  }
  0x39   :  { %554 = vmatprep.subr.bf16.mxu0 %v784_v0  ;;  %v642_v38 = vld [vmem:[#allocation8 + $0x18] sm:$0xff]   ;;  %v644_v40 = vld [vmem:[#allocation8 + $0x8] sm:$0xff]   ;;  %v645_v41 = vld [vmem:[#allocation8] sm:$0xff]  }
  0x3a   :  { %573 = vmatpush3.bf16.msra.mxu1 %v631_v11  ;;  %v501_v42 = vld [vmem:[%s899_s4] ss:$0 sm:$0xff] }
  0x3b   :  { %574 = vmatprep.subr.bf16.mxu1 %v784_v0  ;;  %v512_v58 = vld [vmem:[%s901_s6] ss:$0 sm:$0xff]  ;;  %s750_s6 = scalar_lea.vmem %s476_s24, 256 }
  0x3c   :  { %555 = vmatpush3.bf16.msra.mxu0 %v623_v3  ;;  %p751_p6 = scmp.ne.s32.totalorder %s476_s24, %s750_s6  ;;  %p756_p8 = scmp.lt.s32.totalorder %s750_s6, %s750_s6 }
  0x3d   :  { %556 = vmatprep.subr.bf16.mxu0 %v784_v0 }
  0x3e   :  { %575 = vmatpush3.bf16.msra.mxu1 %v632_v12  ;;  %p757_p9 = por %p756_p8, %p755_p7 }
  0x3f   :  { %576 = vmatprep.subr.bf16.mxu1 %v784_v0 }
  0x40   :  { %557 = vmatpush3.bf16.msra.mxu0 %v624_v4  ;;  %p758_p10 = pnand %p757_p9, %p751_p6 }
  0x41   :  { %558 = vmatprep.subr.bf16.mxu0 %v784_v0 }
  0x42   :  { %577 = vmatpush3.bf16.msra.mxu1 %v633_v13 }
  0x43   :  { %578 = vmatprep.subr.bf16.mxu1 %v784_v0 }
  0x44   :  { %559 = vmatpush3.bf16.msra.mxu0 %v625_v5 }
  0x45   :  { %560 = vmatprep.subr.bf16.mxu0 %v784_v0 }
  0x46   :  { %579 = vmatpush3.bf16.msra.mxu1 %v634_v14 }
  0x47   :  { %580 = vmatprep.subr.bf16.mxu1 %v784_v0 }
  0x48   :  { %561 = vmatpush3.bf16.msra.mxu0 %v626_v6 }
  0x49   :  { %562 = vmatprep.subr.bf16.mxu0 %v784_v0 }
  0x4a   :  { %581 = vmatpush3.bf16.msra.mxu1 %v635_v15 }
  0x4b   :  { %582 = vmatprep.subr.bf16.mxu1 %v784_v0 }
  0x4c   :  { %563 = vmatpush3.bf16.msra.mxu0 %v627_v7 }
  0x4d   :  { %564 = vmatprep.subr.bf16.mxu0 %v784_v0 }
  0x4e   :  { %583 = vmatpush3.bf16.msra.mxu1 %v636_v16 }
  0x4f   :  { %584 = vmatprep.subr.bf16.mxu1 %v784_v0 }
  0x50   :  { %565 = vmatpush3.bf16.msra.mxu0 %v628_v8 }
  0x51   :  { %590 = vmatprep.subr.bf16.mxu0 %v784_v0 }
  0x52   :  { %585 = vmatpush3.bf16.msra.mxu1 %v637_v17 }
  0x53   :  { %567 = vmatmul.mubr.bf16.vlgmr.msra.gmra.mxu0 %v629_v9 }
  0x54   :  { %606 = vmatprep.mubr.msk.bf16.mxu0 %vm785_vm0, %v784_v0  ;;  %591 = vmatpush3.bf16.msra.mxu0 %v638_v34 }
  0x55   :  { %592 = vmatprep.subr.bf16.mxu0 %v784_v0 }
  0x58   :  { %593 = vmatpush3.bf16.msra.mxu0 %v639_v35 }
  0x59   :  { %594 = vmatprep.subr.bf16.mxu0 %v784_v0 }
  0x5c   :  { %595 = vmatpush3.bf16.msra.mxu0 %v640_v36 }
  0x5d   :  { %596 = vmatprep.subr.bf16.mxu0 %v784_v0 }
  0x60   :  { %597 = vmatpush3.bf16.msra.mxu0 %v641_v37 }
  0x61   :  { %598 = vmatprep.subr.bf16.mxu0 %v784_v0 }
  0x64   :  { %599 = vmatpush3.bf16.msra.mxu0 %v642_v38 }
  0x65   :  { %600 = vmatprep.subr.bf16.mxu0 %v784_v0 }
  0x68   :  { %601 = vmatpush3.bf16.msra.mxu0 %v643_v39 }
  0x69   :  { %602 = vmatprep.subr.bf16.mxu0 %v784_v0 }
  0x6c   :  { %603 = vmatpush3.bf16.msra.mxu0 %v644_v40 }
  0x6d   :  { %604 = vmatprep.subr.bf16.mxu0 %v784_v0 }
  0x70   :  { %605 = vmatpush3.bf16.msra.mxu0 %v645_v41 }
 0x113   :  { %v196_v19 = vpop.f32.mrf.mxu0 }
 0x114   :  { %v197_v20 = vadd.f32 %v489_v18, %v196_v19 }
 0x115   :  { %v568_v21 = vpop.f32.mrf.mxu0 }
 0x116   :  { %v499_v22 = vmul.f32 -1.442695, %v197_v20 }
 0x117   :  { %v199_v23 = vpop.f32.mrf.mxu0 }
 0x118   :  { %646 = vpow2.f32 %v499_v22  ;;  %v200_v24 = vadd.f32 %v489_v18, %v199_v23 }
 0x119   :  { %v569_v25 = vpop.f32.mrf.mxu0 }
 0x11a   :  { %v500_v26 = vmul.f32 -1.442695, %v200_v24 }
 0x11c   :  { %648 = vpow2.f32 %v500_v26 }
 0x125   :  { %v647_v27 = vpop.eup %646 }
 0x126   :  { %v209_v28 = vadd.f32 1.0, %v647_v27 }
 0x128   :  { %650 = vrcp.f32 %v209_v28 }
 0x129   :  { %v649_v29 = vpop.eup %648 }
 0x12a   :  { %v210_v30 = vadd.f32 1.0, %v649_v29 }
 0x12c   :  { %652 = vrcp.f32 %v210_v30 }
 0x135   :  { %v651_v31 = vpop.eup %650 }
 0x139   :  { %v653_v32 = vpop.eup %652 }
 0x13a   :  { %v215_v33 = vpack.c.bf16 %v653_v32, %v651_v31 }
 0x13c   :  { %587 = vmatmul.mubr.bf16.vlgmr.msra.gmra.mxu1 %v215_v33 }
 0x1fc   :  { %v321_v43 = vpop.f32.mrf.mxu1 }
 0x1fd   :  { %v322_v44 = vadd.f32 %v501_v42, %v321_v43 }
 0x1fe   :  { %v588_v45 = vpop.f32.mrf.mxu1 }
 0x1ff   :  { %v510_v46 = vmul.f32 -1.442695, %v322_v44 }
 0x200   :  { %v324_v47 = vpop.f32.mrf.mxu1 }
 0x201   :  { %654 = vpow2.f32 %v510_v46  ;;  %v325_v48 = vadd.f32 %v501_v42, %v324_v47 }
 0x202   :  { %v589_v49 = vpop.f32.mrf.mxu1 }
 0x203   :  { %v511_v50 = vmul.f32 -1.442695, %v325_v48 }
 0x205   :  { %656 = vpow2.f32 %v511_v50 }
 0x20e   :  { %v655_v51 = vpop.eup %654 }
 0x20f   :  { %v334_v52 = vadd.f32 1.0, %v655_v51 }
 0x211   :  { %658 = vrcp.f32 %v334_v52 }
 0x212   :  { %v657_v53 = vpop.eup %656 }
 0x213   :  { %v335_v54 = vadd.f32 1.0, %v657_v53 }
 0x215   :  { %660 = vrcp.f32 %v335_v54 }
 0x21e   :  { %v659_v55 = vpop.eup %658 }
 0x222   :  { %v661_v56 = vpop.eup %660 }
 0x223   :  { %v340_v57 = vpack.c.bf16 %v661_v56, %v659_v55 }
 0x225   :  { %607 = vmatmul.mubr.bf16.vlgmr.msra.gmra.mxu0 %v340_v57 }
 0x2e5   :  { %v446_v59 = vpop.f32.mrf.mxu0 }
 0x2e6   :  { %v447_v60 = vadd.f32 %v512_v58, %v446_v59 }
 0x2e7   :  { %v608_v61 = vpop.f32.mrf.mxu0 }
 0x2e8   :  { %v521_v62 = vmul.f32 -1.442695, %v447_v60 }
 0x2e9   :  { %v449_v63 = vpop.f32.mrf.mxu0 }
 0x2ea   :  { %662 = vpow2.f32 %v521_v62  ;;  %v450_v0 = vadd.f32 %v512_v58, %v449_v63 }
 0x2eb   :  { %v609_v1 = vpop.f32.mrf.mxu0 }
 0x2ec   :  { %v522_v2 = vmul.f32 -1.442695, %v450_v0 }
 0x2ee   :  { %664 = vpow2.f32 %v522_v2 }
 0x2f7   :  { %v663_v3 = vpop.eup %662 }
 0x2f8   :  { %v459_v4 = vadd.f32 1.0, %v663_v3 }
 0x2fa   :  { %666 = vrcp.f32 %v459_v4 }
 0x2fb   :  { %v665_v5 = vpop.eup %664 }
 0x2fc   :  { %v460_v6 = vadd.f32 1.0, %v665_v5 }
 0x2fe   :  { %668 = vrcp.f32 %v460_v6 }
 0x307   :  { %v667_v7 = vpop.eup %666 }
 0x30b   :  { %v669_v8 = vpop.eup %668 }
 0x30c   :  { %v465_v9 = vpack.c.bf16 %v669_v8, %v667_v7 }
 0x30e   :  { %v466_v10 = vunpack.c.l.bf16 %v465_v9  ;;  %v467_v11 = vunpack.c.h.bf16 %v465_v9 }
 0x310   :  { %468 = vst [vmem:[#allocation10] sm:$0xff] %v466_v10  ;;  %469 = vst [vmem:[#allocation10 + $0x8] sm:$0xff] %v467_v11 }
 0x311   :  { %761 = shalt.err (!%p758_p10)
}
 0x312   :  { %s787_s25 = smov 128   ;;  %s788_s26 = smov 8  }
 0x313   :  { %481 = dma.vmem_to_hbm [thread:$0]  %s476_s24, 256, %s902_s7, [#allocation4], %s787_s25, %s787_s25, %s788_s26  }
 0x314   :  { %776 = dma.done.wait [#allocation4], 256  }
 0x315   :  { %777 = vsyncadd [#allocation4], 4294967040 }
 0x316   :  { %485 = vsyncpa [#allocation3], 1 }
 0x317   :  { %486 = vsyncpa [#allocation6], 1 }
 0x318   :  { %487 = vsyncpa [#allocation9], 1 }
 0x319   :  { %488 = vsyncpa [#allocation4], 1 }

// kernel: tpu_custom_call.1
= control target key start
LH: loop header
LB: loop body
LE: loop exit
PB: predicated region body
PF: predicated region fallthrough
CT: control target
= control target key end

     0   :  { %12 = vsyncpa [#allocation3], 0  ;;  %s895_s0 = inlined_call_operand.hbm [shape: bf16[16,128], index: 0, kind: input, shape index: {}]   ;;  %s896_s1 = inlined_call_operand.hbm [shape: bf16[128,128], index: 1, kind: input, shape index: {}]   ;;  %s897_s2 = inlined_call_operand.vmem [shape: f32[1,128], index: 2, kind: input, shape index: {}]   ;;  %s898_s3 = inlined_call_operand.hbm [shape: bf16[128,128], index: 3, kind: input, shape index: {}]   ;;  %s899_s4 = inlined_call_operand.vmem [shape: f32[1,128], index: 4, kind: input, shape index: {}]   ;;  %s900_s5 = inlined_call_operand.hbm [shape: bf16[128,128], index: 5, kind: input, shape index: {}]   ;;  %s901_s6 = inlined_call_operand.vmem [shape: f32[1,128], index: 6, kind: input, shape index: {}]   ;;  %s902_s7 = inlined_call_operand.hbm [shape: f32[16,128], index: 7, kind: output, shape index: {}]  }
   0x1   :  { %13 = vsyncpa [#allocation6], 0 }
   0x2   :  { %14 = vsyncpa [#allocation9], 0 }
   0x3   :  { %15 = vsyncpa [#allocation4], 0  ;;  %s778_s24 = smov [#allocation5]   ;;  %s779_s26 = smov [#allocation2]  }
   0x4   :  { %s33_s25 = sshll.u32 %s778_s24, 4  ;;  %s21_s27 = sshll.u32 %s779_s26, 4  ;;  %s34_s25 = int_to_ptr.vmem [resolvable:$true] %s33_s25  ;;  %s22_s27 = int_to_ptr.vmem [resolvable:$true] %s21_s27 }
   0x5   :  { %s678_s28 = scalar_lea.vmem %s34_s25, 1024  ;;  %p683_p1 = scmp.lt.s32.totalorder %s34_s25, %s34_s25 }
   0x6   :  { %p679_p0 = scmp.ne.s32.totalorder %s34_s25, %s678_s28  ;;  %p684_p2 = scmp.lt.s32.totalorder %s678_s28, %s678_s28 }
   0x8   :  { %p685_p3 = por %p684_p2, %p683_p1 }
   0xa   :  { %p686_p4 = pnand %p685_p3, %p679_p0 }
   0xc   :  { %689 = shalt.err (!%p686_p4)
}
   0xd   :  { %s780_s29 = smov 64   ;;  %s781_s30 = smov 4  }
   0xe   :  { %39 = dma.hbm_to_vmem [thread:$0]  %s896_s1, 1024, %s34_s25, [#allocation6], %s780_s29, %s780_s29, %s781_s30  }
   0xf   :  { %s698_s10 = scalar_lea.vmem %s22_s27, 128  ;;  %p703_p6 = scmp.lt.s32.totalorder %s22_s27, %s22_s27 }
  0x10   :  { %p699_p5 = scmp.ne.s32.totalorder %s22_s27, %s698_s10  ;;  %p704_p7 = scmp.lt.s32.totalorder %s698_s10, %s698_s10 }
  0x12   :  { %p705_p8 = por %p704_p7, %p703_p6 }
  0x14   :  { %p706_p9 = pnand %p705_p8, %p699_p5 }
  0x16   :  { %709 = shalt.err (!%p706_p9)
}
  0x17   :  { %27 = dma.hbm_to_vmem [thread:$0]  %s895_s0, 128, %s22_s27, [#allocation3], %s780_s29, %s780_s29, %s781_s30  }
  0x18   :  { %s782_s13 = smov [#allocation7]   ;;  %s783_s15 = smov [#allocation8]  }
  0x19   :  { %s47_s14 = sshll.u32 %s782_s13, 4  ;;  %s61_s16 = sshll.u32 %s783_s15, 4  ;;  %s48_s14 = int_to_ptr.vmem [resolvable:$true] %s47_s14  ;;  %s62_s16 = int_to_ptr.vmem [resolvable:$true] %s61_s16 }
  0x1a   :  { %s718_s1 = scalar_lea.vmem %s48_s14, 1024  ;;  %p723_p11 = scmp.lt.s32.totalorder %s48_s14, %s48_s14 }
  0x1b   :  { %p719_p10 = scmp.ne.s32.totalorder %s48_s14, %s718_s1  ;;  %p724_p12 = scmp.lt.s32.totalorder %s718_s1, %s718_s1 }
  0x1d   :  { %p725_p13 = por %p724_p12, %p723_p11 }
  0x1f   :  { %p726_p0 = pnand %p725_p13, %p719_p10 }
  0x21   :  { %729 = shalt.err (!%p726_p0)
}
  0x22   :  { %53 = dma.hbm_to_vmem [thread:$0]  %s898_s3, 1024, %s48_s14, [#allocation6], %s780_s29, %s780_s29, %s781_s30  }
  0x23   :  { %s738_s0 = scalar_lea.vmem %s62_s16, 1024  ;;  %p743_p2 = scmp.lt.s32.totalorder %s62_s16, %s62_s16 }
  0x24   :  { %p739_p1 = scmp.ne.s32.totalorder %s62_s16, %s738_s0  ;;  %p744_p3 = scmp.lt.s32.totalorder %s738_s0, %s738_s0 }
  0x26   :  { %p745_p4 = por %p744_p3, %p743_p2 }
  0x28   :  { %p746_p5 = pnand %p745_p4, %p739_p1 }
  0x2a   :  { %749 = shalt.err (!%p746_p5)
}
  0x2b   :  { %67 = dma.hbm_to_vmem [thread:$0]  %s900_s5, 1024, %s62_s16, [#allocation9], %s780_s29, %s780_s29, %s781_s30  }
  0x2c   :  { %770 = dma.done.wait [#allocation3], 128  }
  0x2d   :  { %771 = vsyncadd [#allocation3], 4294967168 }
  0x2e   :  { %772 = dma.done.wait [#allocation6], 2048  }
  0x2f   :  { %773 = vsyncadd [#allocation6], 4294965248 }
  0x30   :  { %774 = dma.done.wait [#allocation9], 1024  }
  0x31   :  { %775 = vsyncadd [#allocation9], 4294966272  ;;  %v784_v0 = vmov 0.0   ;;  %vm785_vm0 = vmmov 0   ;;  %v621_v1 = vld [vmem:[#allocation5 + $0x38] sm:$0xff]   ;;  %v622_v2 = vld [vmem:[#allocation5 + $0x30] sm:$0xff]  }
  0x32   :  { %550 = vmatprep.subr.bf16.mxu0 %v784_v0  ;;  %566 = vmatprep.mubr.msk.bf16.mxu0 %vm785_vm0, %v784_v0  ;;  %v623_v3 = vld [vmem:[#allocation5 + $0x28] sm:$0xff]   ;;  %v624_v4 = vld [vmem:[#allocation5 + $0x20] sm:$0xff]   ;;  %v625_v5 = vld [vmem:[#allocation5 + $0x18] sm:$0xff]   ;;  %s786_s23 = smov [#allocation10]  }
  0x33   :  { %570 = vmatprep.subr.bf16.mxu1 %v784_v0  ;;  %586 = vmatprep.mubr.msk.bf16.mxu1 %vm785_vm0, %v784_v0  ;;  %v626_v6 = vld [vmem:[#allocation5 + $0x10] sm:$0xff]   ;;  %v627_v7 = vld [vmem:[#allocation5 + $0x8] sm:$0xff]   ;;  %v628_v8 = vld [vmem:[#allocation5] sm:$0xff]   ;;  %s475_s24 = sshll.u32 %s786_s23, 4  ;;  %s476_s24 = int_to_ptr.vmem [resolvable:$true] %s475_s24 }
  0x34   :  { %551 = vmatpush3.bf16.msra.mxu0 %v621_v1  ;;  %v629_v9 = vld [vmem:[#allocation2] sm:$0xff]   ;;  %v631_v11 = vld [vmem:[#allocation7 + $0x30] sm:$0xff]   ;;  %v632_v12 = vld [vmem:[#allocation7 + $0x28] sm:$0xff]   ;;  %p755_p7 = scmp.lt.s32.totalorder %s476_s24, %s476_s24 }
  0x35   :  { %552 = vmatprep.subr.bf16.mxu0 %v784_v0  ;;  %v630_v10 = vld [vmem:[#allocation7 + $0x38] sm:$0xff]   ;;  %v633_v13 = vld [vmem:[#allocation7 + $0x20] sm:$0xff]   ;;  %v635_v15 = vld [vmem:[#allocation7 + $0x10] sm:$0xff]  }
  0x36   :  { %571 = vmatpush3.bf16.msra.mxu1 %v630_v10  ;;  %v634_v14 = vld [vmem:[#allocation7 + $0x18] sm:$0xff]   ;;  %v636_v16 = vld [vmem:[#allocation7 + $0x8] sm:$0xff]   ;;  %v637_v17 = vld [vmem:[#allocation7] sm:$0xff]  }
  0x37   :  { %572 = vmatprep.subr.bf16.mxu1 %v784_v0  ;;  %v489_v18 = vld [vmem:[%s897_s2] ss:$0 sm:$0xff]  ;;  %v639_v35 = vld [vmem:[#allocation8 + $0x30] sm:$0xff]   ;;  %v640_v36 = vld [vmem:[#allocation8 + $0x28] sm:$0xff]  }
  0x38   :  { %553 = vmatpush3.bf16.msra.mxu0 %v622_v2  ;;  %v638_v34 = vld [vmem:[#allocation8 + $0x38] sm:$0xff]   ;;  %v641_v37 = vld [vmem:[#allocation8 + $0x20] sm:$0xff]   ;;  %v643_v39 = vld [vmem:[#allocation8 + $0x10] sm:$0xff]  }
  0x39   :  { %554 = vmatprep.subr.bf16.mxu0 %v784_v0  ;;  %v642_v38 = vld [vmem:[#allocation8 + $0x18] sm:$0xff]   ;;  %v644_v40 = vld [vmem:[#allocation8 + $0x8] sm:$0xff]   ;;  %v645_v41 = vld [vmem:[#allocation8] sm:$0xff]  }
  0x3a   :  { %573 = vmatpush3.bf16.msra.mxu1 %v631_v11  ;;  %v501_v42 = vld [vmem:[%s899_s4] ss:$0 sm:$0xff] }
  0x3b   :  { %574 = vmatprep.subr.bf16.mxu1 %v784_v0  ;;  %v512_v58 = vld [vmem:[%s901_s6] ss:$0 sm:$0xff]  ;;  %s750_s6 = scalar_lea.vmem %s476_s24, 256 }
  0x3c   :  { %555 = vmatpush3.bf16.msra.mxu0 %v623_v3  ;;  %p751_p6 = scmp.ne.s32.totalorder %s476_s24, %s750_s6  ;;  %p756_p8 = scmp.lt.s32.totalorder %s750_s6, %s750_s6 }
  0x3d   :  { %556 = vmatprep.subr.bf16.mxu0 %v784_v0 }
  0x3e   :  { %575 = vmatpush3.bf16.msra.mxu1 %v632_v12  ;;  %p757_p9 = por %p756_p8, %p755_p7 }
  0x3f   :  { %576 = vmatprep.subr.bf16.mxu1 %v784_v0 }
  0x40   :  { %557 = vmatpush3.bf16.msra.mxu0 %v624_v4  ;;  %p758_p10 = pnand %p757_p9, %p751_p6 }
  0x41   :  { %558 = vmatprep.subr.bf16.mxu0 %v784_v0 }
  0x42   :  { %577 = vmatpush3.bf16.msra.mxu1 %v633_v13 }
  0x43   :  { %578 = vmatprep.subr.bf16.mxu1 %v784_v0 }
  0x44   :  { %559 = vmatpush3.bf16.msra.mxu0 %v625_v5 }
  0x45   :  { %560 = vmatprep.subr.bf16.mxu0 %v784_v0 }
  0x46   :  { %579 = vmatpush3.bf16.msra.mxu1 %v634_v14 }
  0x47   :  { %580 = vmatprep.subr.bf16.mxu1 %v784_v0 }
  0x48   :  { %561 = vmatpush3.bf16.msra.mxu0 %v626_v6 }
  0x49   :  { %562 = vmatprep.subr.bf16.mxu0 %v784_v0 }
  0x4a   :  { %581 = vmatpush3.bf16.msra.mxu1 %v635_v15 }
  0x4b   :  { %582 = vmatprep.subr.bf16.mxu1 %v784_v0 }
  0x4c   :  { %563 = vmatpush3.bf16.msra.mxu0 %v627_v7 }
  0x4d   :  { %564 = vmatprep.subr.bf16.mxu0 %v784_v0 }
  0x4e   :  { %583 = vmatpush3.bf16.msra.mxu1 %v636_v16 }
  0x4f   :  { %584 = vmatprep.subr.bf16.mxu1 %v784_v0 }
  0x50   :  { %565 = vmatpush3.bf16.msra.mxu0 %v628_v8 }
  0x51   :  { %590 = vmatprep.subr.bf16.mxu0 %v784_v0 }
  0x52   :  { %585 = vmatpush3.bf16.msra.mxu1 %v637_v17 }
  0x53   :  { %567 = vmatmul.mubr.bf16.vlgmr.msra.gmra.mxu0 %v629_v9 }
  0x54   :  { %606 = vmatprep.mubr.msk.bf16.mxu0 %vm785_vm0, %v784_v0  ;;  %591 = vmatpush3.bf16.msra.mxu0 %v638_v34 }
  0x55   :  { %592 = vmatprep.subr.bf16.mxu0 %v784_v0 }
  0x58   :  { %593 = vmatpush3.bf16.msra.mxu0 %v639_v35 }
  0x59   :  { %594 = vmatprep.subr.bf16.mxu0 %v784_v0 }
  0x5c   :  { %595 = vmatpush3.bf16.msra.mxu0 %v640_v36 }
  0x5d   :  { %596 = vmatprep.subr.bf16.mxu0 %v784_v0 }
  0x60   :  { %597 = vmatpush3.bf16.msra.mxu0 %v641_v37 }
  0x61   :  { %598 = vmatprep.subr.bf16.mxu0 %v784_v0 }
  0x64   :  { %599 = vmatpush3.bf16.msra.mxu0 %v642_v38 }
  0x65   :  { %600 = vmatprep.subr.bf16.mxu0 %v784_v0 }
  0x68   :  { %601 = vmatpush3.bf16.msra.mxu0 %v643_v39 }
  0x69   :  { %602 = vmatprep.subr.bf16.mxu0 %v784_v0 }
  0x6c   :  { %603 = vmatpush3.bf16.msra.mxu0 %v644_v40 }
  0x6d   :  { %604 = vmatprep.subr.bf16.mxu0 %v784_v0 }
  0x70   :  { %605 = vmatpush3.bf16.msra.mxu0 %v645_v41 }
 0x113   :  { %v196_v19 = vpop.f32.mrf.mxu0 }
 0x114   :  { %v197_v20 = vadd.f32 %v489_v18, %v196_v19 }
 0x115   :  { %v568_v21 = vpop.f32.mrf.mxu0 }
 0x116   :  { %v499_v22 = vmul.f32 -1.442695, %v197_v20 }
 0x117   :  { %v199_v23 = vpop.f32.mrf.mxu0 }
 0x118   :  { %646 = vpow2.f32 %v499_v22  ;;  %v200_v24 = vadd.f32 %v489_v18, %v199_v23 }
 0x119   :  { %v569_v25 = vpop.f32.mrf.mxu0 }
 0x11a   :  { %v500_v26 = vmul.f32 -1.442695, %v200_v24 }
 0x11c   :  { %648 = vpow2.f32 %v500_v26 }
 0x125   :  { %v647_v27 = vpop.eup %646 }
 0x126   :  { %v209_v28 = vadd.f32 1.0, %v647_v27 }
 0x128   :  { %650 = vrcp.f32 %v209_v28 }
 0x129   :  { %v649_v29 = vpop.eup %648 }
 0x12a   :  { %v210_v30 = vadd.f32 1.0, %v649_v29 }
 0x12c   :  { %652 = vrcp.f32 %v210_v30 }
 0x135   :  { %v651_v31 = vpop.eup %650 }
 0x139   :  { %v653_v32 = vpop.eup %652 }
 0x13a   :  { %v215_v33 = vpack.c.bf16 %v653_v32, %v651_v31 }
 0x13c   :  { %587 = vmatmul.mubr.bf16.vlgmr.msra.gmra.mxu1 %v215_v33 }
 0x1fc   :  { %v321_v43 = vpop.f32.mrf.mxu1 }
 0x1fd   :  { %v322_v44 = vadd.f32 %v501_v42, %v321_v43 }
 0x1fe   :  { %v588_v45 = vpop.f32.mrf.mxu1 }
 0x1ff   :  { %v510_v46 = vmul.f32 -1.442695, %v322_v44 }
 0x200   :  { %v324_v47 = vpop.f32.mrf.mxu1 }
 0x201   :  { %654 = vpow2.f32 %v510_v46  ;;  %v325_v48 = vadd.f32 %v501_v42, %v324_v47 }
 0x202   :  { %v589_v49 = vpop.f32.mrf.mxu1 }
 0x203   :  { %v511_v50 = vmul.f32 -1.442695, %v325_v48 }
 0x205   :  { %656 = vpow2.f32 %v511_v50 }
 0x20e   :  { %v655_v51 = vpop.eup %654 }
 0x20f   :  { %v334_v52 = vadd.f32 1.0, %v655_v51 }
 0x211   :  { %658 = vrcp.f32 %v334_v52 }
 0x212   :  { %v657_v53 = vpop.eup %656 }
 0x213   :  { %v335_v54 = vadd.f32 1.0, %v657_v53 }
 0x215   :  { %660 = vrcp.f32 %v335_v54 }
 0x21e   :  { %v659_v55 = vpop.eup %658 }
 0x222   :  { %v661_v56 = vpop.eup %660 }
 0x223   :  { %v340_v57 = vpack.c.bf16 %v661_v56, %v659_v55 }
 0x225   :  { %607 = vmatmul.mubr.bf16.vlgmr.msra.gmra.mxu0 %v340_v57 }
 0x2e5   :  { %v446_v59 = vpop.f32.mrf.mxu0 }
 0x2e6   :  { %v447_v60 = vadd.f32 %v512_v58, %v446_v59 }
 0x2e7   :  { %v608_v61 = vpop.f32.mrf.mxu0 }
 0x2e8   :  { %v521_v62 = vmul.f32 -1.442695, %v447_v60 }
 0x2e9   :  { %v449_v63 = vpop.f32.mrf.mxu0 }
 0x2ea   :  { %662 = vpow2.f32 %v521_v62  ;;  %v450_v0 = vadd.f32 %v512_v58, %v449_v63 }
 0x2eb   :  { %v609_v1 = vpop.f32.mrf.mxu0 }
 0x2ec   :  { %v522_v2 = vmul.f32 -1.442695, %v450_v0 }
 0x2ee   :  { %664 = vpow2.f32 %v522_v2 }
 0x2f7   :  { %v663_v3 = vpop.eup %662 }
 0x2f8   :  { %v459_v4 = vadd.f32 1.0, %v663_v3 }
 0x2fa   :  { %666 = vrcp.f32 %v459_v4 }
 0x2fb   :  { %v665_v5 = vpop.eup %664 }
 0x2fc   :  { %v460_v6 = vadd.f32 1.0, %v665_v5 }
 0x2fe   :  { %668 = vrcp.f32 %v460_v6 }
 0x307   :  { %v667_v7 = vpop.eup %666 }
 0x30b   :  { %v669_v8 = vpop.eup %668 }
 0x30c   :  { %v465_v9 = vpack.c.bf16 %v669_v8, %v667_v7 }
 0x30e   :  { %v466_v10 = vunpack.c.l.bf16 %v465_v9  ;;  %v467_v11 = vunpack.c.h.bf16 %v465_v9 }
 0x310   :  { %468 = vst [vmem:[#allocation10] sm:$0xff] %v466_v10  ;;  %469 = vst [vmem:[#allocation10 + $0x8] sm:$0xff] %v467_v11 }
 0x311   :  { %761 = shalt.err (!%p758_p10)
}
 0x312   :  { %s787_s25 = smov 128   ;;  %s788_s26 = smov 8  }
 0x313   :  { %481 = dma.vmem_to_hbm [thread:$0]  %s476_s24, 256, %s902_s7, [#allocation4], %s787_s25, %s787_s25, %s788_s26  }
 0x314   :  { %776 = dma.done.wait [#allocation4], 256  }
 0x315   :  { %777 = vsyncadd [#allocation4], 4294967040 }
 0x316   :  { %485 = vsyncpa [#allocation3], 1 }
 0x317   :  { %486 = vsyncpa [#allocation6], 1 }
 0x318   :  { %487 = vsyncpa [#allocation9], 1 }
 0x319   :  { %488 = vsyncpa [#allocation4], 1 }

</bundles_post_ra>
